<compile_context>
chip_gen: v5e
topology: v5e:2x2
jax: 0.10.0
libtpu: 0.0.40
codegen_flags: <defaults>
</compile_context>

<pallas_src>
import functools

import jax
import jax.numpy as jnp
from jax import lax
from jax.experimental import pallas as pl
from jax.experimental.pallas import tpu as pltpu

_SUBLANES = 8  # f32 sublane count; batch is padded up to a multiple of this.


def _rnn_kernel(seq_len, bp, q, x_ref, w1t_ref, w2t_ref, w3_ref, bh_ref,
                yt_ref):
    # x_ref:   (S*Bp, 1)  time-major scalar input, batch zero-padded to Bp
    # w1t_ref: (1, H)    w2t_ref: (H, H) (= W2^T = A)    w3_ref: (O, H)
    # bh_ref:  (1, H)
    # yt_ref:  (O, S*Bp) transposed output -> single lane-dense unmasked store
    hb = q * bp                     # rows per fused macro-block
    nblk = seq_len // q             # serial-chain length
    h_dim = w2t_ref.shape[1]

    a = w2t_ref[...]

    # ---------------- fully parallel prologue (off the serial chain) -------
    # Input projection + bias for every step at once:
    #   U[s*Bp + b, :] = x[s, b] * W1^T + b_h
    u = x_ref[...] * w1t_ref[...] + bh_ref[...]            # (S*Bp, H)

    # Powers of A up to A^q via a log-depth chain of tiny (H,H) matmuls.
    a_pow = [None, a]
    for k in range(2, q + 1):
        a_pow.append(jnp.dot(a_pow[k // 2], a_pow[k - k // 2],
                             preferred_element_type=jnp.float32))

    # Fused inputs  V_t = sum_{j<q} u_{t-j} @ A^j   (terms with t-j < 1 are 0)
    # built from q-1 fully-parallel (S*Bp,H)@(H,H) matmuls + shifted adds.
    v = u
    for j in range(1, q):
        uaj = jnp.dot(u, a_pow[j], preferred_element_type=jnp.float32)
        shifted = jnp.concatenate(
            [jnp.zeros((j * bp, h_dim), jnp.float32),
             uaj[:(seq_len - j) * bp, :]],
            axis=0)
        v = v + shifted

    # ---------------- serial chain: nblk-1 dependent block matmuls ---------
    #   block_k = [h_{kq+1}; ...; h_{kq+q}]  (stacked along sublanes)
    #   block_{k+1} = block_k @ A^q + V_block_{k+1}
    # NOTE: this fused linear form is only valid for f_hidden=None (the
    # module default).
    # TODO(synk): if f_hidden is configured (e.g. 'tanh'), fall back to the
    # per-step recurrence and apply the nonlinearity to h every step.
    a_q = a_pow[q]
    blk = v[0:hb, :]
    blocks = [blk]
    for k in range(1, nblk):
        blk = (jnp.dot(blk, a_q, preferred_element_type=jnp.float32)
               + v[k * hb:(k + 1) * hb, :])
        blocks.append(blk)

    hist = jnp.concatenate(blocks, axis=0)                 # (S*Bp, H), vregs

    # ---------------- lane-dense epilogue:  y^T = W3 @ hist^T --------------
    yt_ref[...] = lax.dot_general(
        w3_ref[...], hist,
        dimension_numbers=(((1,), (1,)), ((), ())),
        preferred_element_type=jnp.float32)                # (O, S*Bp)


def custom_rnn_forward(x, W1, W2, W3, b_h):
    """x: (B, S) float32; W1:(H,1), W2:(H,H), W3:(O,H), b_h:(H,) -> (B, S, O)."""
    B, S = x.shape
    H = W2.shape[0]
    O = W3.shape[0]
    Bp = ((B + _SUBLANES - 1) // _SUBLANES) * _SUBLANES
    q = 4 if S % 4 == 0 else (2 if S % 2 == 0 else 1)      # fusion stride

    # Time-major, batch zero-padded to Bp, flattened to a (S*Bp, 1) column.
    x_tm = jnp.transpose(x, (1, 0)).astype(jnp.float32)    # (S, B)
    x_tm = jnp.pad(x_tm, ((0, 0), (0, Bp - B)))            # (S, Bp)
    x_col = x_tm.reshape(S * Bp, 1)

    w1t = jnp.transpose(W1).astype(jnp.float32)            # (1, H)
    w2t = jnp.transpose(W2).astype(jnp.float32)            # (H, H) = A
    w3 = W3.astype(jnp.float32)                            # (O, H)
    bh = b_h.reshape(1, H).astype(jnp.float32)             # (1, H)

    kernel = functools.partial(_rnn_kernel, S, Bp, q)
    vmem = pl.BlockSpec(memory_space=pltpu.MemorySpace.VMEM)

    y_t = pl.pallas_call(
        kernel,
        out_shape=jax.ShapeDtypeStruct((O, S * Bp), jnp.float32),
        in_specs=[vmem, vmem, vmem, vmem, vmem],
        out_specs=vmem,
    )(x_col, w1t, w2t, w3, bh)                             # (O, S*Bp)

    y = jnp.transpose(y_t).reshape(S, Bp, O)[:, :B, :]     # drop batch pad
    return jnp.transpose(y, (1, 0, 2))                     # (B, S, O)


def custom_rnn_ref(x, W1, W2, W3, b_h):
    """Pure-JAX reference mirroring the PyTorch loop."""
    B, S = x.shape
    H = W2.shape[0]
    h = jnp.zeros((B, H), jnp.float32)
    ys = []
    for i in range(S):
        xi = x[:, i:i + 1]                                 # (B, 1)
        h = h @ W2.T + xi @ W1.T + b_h
        ys.append(h @ W3.T)
    return jnp.stack(ys, axis=1)                           # (B, S, O)


if __name__ == "__main__":
    key = jax.random.PRNGKey(0)
    k1, k2, k3, kx = jax.random.split(key, 4)

    batch, seq = 4, 16
    input_size, hidden_size, output_size = 1, 32, 8
    W_scale = 0.1

    # Deterministic parameter init mirroring (torch.rand(...) - 0.5) * W_scale
    W1 = (jax.random.uniform(k1, (hidden_size, input_size)) - 0.5) * W_scale
    W2 = (jax.random.uniform(k2, (hidden_size, hidden_size)) - 0.5) * W_scale
    W3 = (jax.random.uniform(k3, (output_size, hidden_size)) - 0.5) * W_scale
    b_h = jnp.zeros((hidden_size,), jnp.float32)

    x = jax.random.normal(kx, (batch, seq), dtype=jnp.float32)

    y = jax.block_until_ready(custom_rnn_forward(x, W1, W2, W3, b_h))
    y_ref = custom_rnn_ref(x, W1, W2, W3, b_h)

    assert y.shape == (batch, seq, output_size), y.shape
    assert jnp.allclose(y, y_ref, atol=1e-5, rtol=1e-5), \
        float(jnp.max(jnp.abs(y - y_ref)))
    print("KERNEL_OK")
</pallas_src>

<mosaic_0001>
module attributes {stable_mosaic.version = 11 : i64} {
  func.func @_rnn_kernel(%arg0: memref<128x1xf32, #tpu.memory_space<vmem>>, %arg1: memref<1x32xf32, #tpu.memory_space<vmem>>, %arg2: memref<32x32xf32, #tpu.memory_space<vmem>>, %arg3: memref<8x32xf32, #tpu.memory_space<vmem>>, %arg4: memref<1x32xf32, #tpu.memory_space<vmem>>, %arg5: memref<8x128xf32, #tpu.memory_space<vmem>>) attributes {dimension_semantics = [], scalar_prefetch = 0 : i64, scratch_operands = 0 : i64, tpu.core_type = #tpu.core_type<tc>} {
    %c0 = arith.constant 0 : index
    %c0_0 = arith.constant 0 : index
    %0 = vector.load %arg2[%c0, %c0_0] : memref<32x32xf32, #tpu.memory_space<vmem>>, vector<32x32xf32>
    %c0_1 = arith.constant 0 : index
    %c0_2 = arith.constant 0 : index
    %1 = vector.load %arg0[%c0_1, %c0_2] : memref<128x1xf32, #tpu.memory_space<vmem>>, vector<128x1xf32>
    %c0_3 = arith.constant 0 : index
    %c0_4 = arith.constant 0 : index
    %2 = vector.load %arg1[%c0_3, %c0_4] : memref<1x32xf32, #tpu.memory_space<vmem>>, vector<1x32xf32>
    %3 = vector.broadcast %1 : vector<128x1xf32> to vector<128x32xf32>
    %4 = vector.broadcast %2 : vector<1x32xf32> to vector<128x32xf32>
    %5 = arith.mulf %3, %4 : vector<128x32xf32>
    %c0_5 = arith.constant 0 : index
    %c0_6 = arith.constant 0 : index
    %6 = vector.load %arg4[%c0_5, %c0_6] : memref<1x32xf32, #tpu.memory_space<vmem>>, vector<1x32xf32>
    %7 = vector.broadcast %6 : vector<1x32xf32> to vector<128x32xf32>
    %8 = arith.addf %5, %7 : vector<128x32xf32>
    %cst = arith.constant dense<0.000000e+00> : vector<32x32xf32>
    %9 = tpu.matmul %0, %0, %cst {dimension_numbers = #tpu.dot_dimension_numbers<[1], [0], [0], [1], [0, 0, 1, 1], [], []>} : vector<32x32xf32>, vector<32x32xf32>, vector<32x32xf32> -> vector<32x32xf32>
    %cst_7 = arith.constant dense<0.000000e+00> : vector<32x32xf32>
    %10 = tpu.matmul %0, %9, %cst_7 {dimension_numbers = #tpu.dot_dimension_numbers<[1], [0], [0], [1], [0, 0, 1, 1], [], []>} : vector<32x32xf32>, vector<32x32xf32>, vector<32x32xf32> -> vector<32x32xf32>
    %cst_8 = arith.constant dense<0.000000e+00> : vector<32x32xf32>
    %11 = tpu.matmul %9, %9, %cst_8 {dimension_numbers = #tpu.dot_dimension_numbers<[1], [0], [0], [1], [0, 0, 1, 1], [], []>} : vector<32x32xf32>, vector<32x32xf32>, vector<32x32xf32> -> vector<32x32xf32>
    %cst_9 = arith.constant dense<0.000000e+00> : vector<128x32xf32>
    %12 = tpu.matmul %8, %0, %cst_9 {dimension_numbers = #tpu.dot_dimension_numbers<[1], [0], [0], [1], [0, 0, 1, 1], [], []>} : vector<128x32xf32>, vector<32x32xf32>, vector<128x32xf32> -> vector<128x32xf32>
    %cst_10 = arith.constant 0.000000e+00 : f32
    %13 = vector.broadcast %cst_10 : f32 to vector<8x32xf32>
    %14 = vector.extract_strided_slice %12 {offsets = [0, 0], sizes = [120, 32], strides = [1, 1]} : vector<128x32xf32> to vector<120x32xf32>
    %15 = tpu.concatenate %13, %14 in 0 : vector<8x32xf32>, vector<120x32xf32> -> vector<128x32xf32>
    %16 = arith.addf %8, %15 : vector<128x32xf32>
    %cst_11 = arith.constant dense<0.000000e+00> : vector<128x32xf32>
    %17 = tpu.matmul %8, %9, %cst_11 {dimension_numbers = #tpu.dot_dimension_numbers<[1], [0], [0], [1], [0, 0, 1, 1], [], []>} : vector<128x32xf32>, vector<32x32xf32>, vector<128x32xf32> -> vector<128x32xf32>
    %cst_12 = arith.constant 0.000000e+00 : f32
    %18 = vector.broadcast %cst_12 : f32 to vector<16x32xf32>
    %19 = vector.extract_strided_slice %17 {offsets = [0, 0], sizes = [112, 32], strides = [1, 1]} : vector<128x32xf32> to vector<112x32xf32>
    %20 = tpu.concatenate %18, %19 in 0 : vector<16x32xf32>, vector<112x32xf32> -> vector<128x32xf32>
    %21 = arith.addf %16, %20 : vector<128x32xf32>
    %cst_13 = arith.constant dense<0.000000e+00> : vector<128x32xf32>
    %22 = tpu.matmul %8, %10, %cst_13 {dimension_numbers = #tpu.dot_dimension_numbers<[1], [0], [0], [1], [0, 0, 1, 1], [], []>} : vector<128x32xf32>, vector<32x32xf32>, vector<128x32xf32> -> vector<128x32xf32>
    %cst_14 = arith.constant 0.000000e+00 : f32
    %23 = vector.broadcast %cst_14 : f32 to vector<24x32xf32>
    %24 = vector.extract_strided_slice %22 {offsets = [0, 0], sizes = [104, 32], strides = [1, 1]} : vector<128x32xf32> to vector<104x32xf32>
    %25 = tpu.concatenate %23, %24 in 0 : vector<24x32xf32>, vector<104x32xf32> -> vector<128x32xf32>
    %26 = arith.addf %21, %25 : vector<128x32xf32>
    %27 = vector.extract_strided_slice %26 {offsets = [0, 0], sizes = [32, 32], strides = [1, 1]} : vector<128x32xf32> to vector<32x32xf32>
    %cst_15 = arith.constant dense<0.000000e+00> : vector<32x32xf32>
    %28 = tpu.matmul %27, %11, %cst_15 {dimension_numbers = #tpu.dot_dimension_numbers<[1], [0], [0], [1], [0, 0, 1, 1], [], []>} : vector<32x32xf32>, vector<32x32xf32>, vector<32x32xf32> -> vector<32x32xf32>
    %29 = vector.extract_strided_slice %26 {offsets = [32, 0], sizes = [32, 32], strides = [1, 1]} : vector<128x32xf32> to vector<32x32xf32>
    %30 = arith.addf %28, %29 : vector<32x32xf32>
    %cst_16 = arith.constant dense<0.000000e+00> : vector<32x32xf32>
    %31 = tpu.matmul %30, %11, %cst_16 {dimension_numbers = #tpu.dot_dimension_numbers<[1], [0], [0], [1], [0, 0, 1, 1], [], []>} : vector<32x32xf32>, vector<32x32xf32>, vector<32x32xf32> -> vector<32x32xf32>
    %32 = vector.extract_strided_slice %26 {offsets = [64, 0], sizes = [32, 32], strides = [1, 1]} : vector<128x32xf32> to vector<32x32xf32>
    %33 = arith.addf %31, %32 : vector<32x32xf32>
    %cst_17 = arith.constant dense<0.000000e+00> : vector<32x32xf32>
    %34 = tpu.matmul %33, %11, %cst_17 {dimension_numbers = #tpu.dot_dimension_numbers<[1], [0], [0], [1], [0, 0, 1, 1], [], []>} : vector<32x32xf32>, vector<32x32xf32>, vector<32x32xf32> -> vector<32x32xf32>
    %35 = vector.extract_strided_slice %26 {offsets = [96, 0], sizes = [32, 32], strides = [1, 1]} : vector<128x32xf32> to vector<32x32xf32>
    %36 = arith.addf %34, %35 : vector<32x32xf32>
    %37 = tpu.concatenate %27, %30, %33, %36 in 0 : vector<32x32xf32>, vector<32x32xf32>, vector<32x32xf32>, vector<32x32xf32> -> vector<128x32xf32>
    %c0_18 = arith.constant 0 : index
    %c0_19 = arith.constant 0 : index
    %38 = vector.load %arg3[%c0_18, %c0_19] : memref<8x32xf32, #tpu.memory_space<vmem>>, vector<8x32xf32>
    %cst_20 = arith.constant dense<0.000000e+00> : vector<8x128xf32>
    %39 = tpu.matmul %38, %37, %cst_20 {dimension_numbers = #tpu.dot_dimension_numbers<[1], [1], [0], [0], [0, 0, 1, 0], [], []>} : vector<8x32xf32>, vector<128x32xf32>, vector<8x128xf32> -> vector<8x128xf32>
    %c0_21 = arith.constant 0 : index
    %c0_22 = arith.constant 0 : index
    %40 = vector.load %arg5[%c0_21, %c0_22] : memref<8x128xf32, #tpu.memory_space<vmem>>, vector<8x128xf32>
    tpu.vector_store %arg5[%c0_21, %c0_22], %39 {strides = array<i32>} : memref<8x128xf32, #tpu.memory_space<vmem>>, vector<8x128xf32>,
    return
  }
}

</mosaic_0001>

<bundles_post_ra>
// kernel: tpu_custom_call.1
= control target key start
LH: loop header
LB: loop body
LE: loop exit
PB: predicated region body
PF: predicated region fallthrough
CT: control target
= control target key end

     0   :  { %v864_v3 = vmov 0   ;;  %vm161_vm0 = vcmask 261120   ;;  %s1249_s0 = inlined_call_operand.vmem [shape: f32[128,1], index: 0, kind: input, shape index: {}]   ;;  %s1250_s1 = inlined_call_operand.vmem [shape: f32[1,32], index: 1, kind: input, shape index: {}]   ;;  %s1251_s2 = inlined_call_operand.vmem [shape: f32[32,32], index: 2, kind: input, shape index: {}]   ;;  %s1252_s3 = inlined_call_operand.vmem [shape: f32[8,32], index: 3, kind: input, shape index: {}]   ;;  %s1253_s4 = inlined_call_operand.vmem [shape: f32[1,32], index: 4, kind: input, shape index: {}]   ;;  %s1254_s5 = inlined_call_operand.hbm [shape: f32[8,128], index: 5, kind: output, shape index: {}]  }
   0x1   :  { %v899_v0 = vld [vmem:[%s1251_s2 + $0x18] sm:$0xff]  ;;  %v25_v1 = vld [vmem:[%s1249_s0] sm:$0xff]  ;;  %v907_v2 = vld [vmem:[%s1251_s2 + $0x10] sm:$0xff]  ;;  %833 = vset.pattern.permute.xlu0 %v864_v3  ;;  %834 = vset.pattern.permute.xlu1 %v864_v3 }
   0x2   :  { %823 = vmatpush.msra.mxu2 %v899_v0  ;;  %44 = vperm.xlu0 %833, %v25_v1   ;;  %v913_v4 = vld [vmem:[%s1251_s2 + $0x8] sm:$0xff]  ;;  %v27_v5 = vld [vmem:[%s1249_s0 + $0x10] sm:$0xff]  ;;  %v29_v6 = vld [vmem:[%s1249_s0 + $0x20] sm:$0xff] }
   0x3   :  { %54 = vperm.xlu1 %834, %v27_v5   ;;  %v925_v7 = vld [vmem:[%s1251_s2] sm:$0xff]  ;;  %186 = vmatpush.msra.mxu0 %v899_v0  ;;  %v26_v8 = vld [vmem:[%s1249_s0 + $0x8] sm:$0xff] }
   0x4   :  { %824 = vmatpush.msra.mxu2 %v907_v2  ;;  %835 = vset.pattern.permute.xlu2 %v864_v3 }
   0x5   :  { %64 = vperm.xlu2 %835, %v29_v6   ;;  %187 = vmatpush.msra.mxu0 %v907_v2 }
   0x6   :  { %825 = vmatpush.msra.mxu2 %v913_v4  ;;  %333 = vmatpush.msra.mxu3 %v899_v0 }
   0x8   :  { %826 = vmatpush.msra.mxu2 %v925_v7 }
   0x9   :  { %10 = vsyncpa [#allocation3], 0  ;;  %735 = vmatmul.msk.f32.vlgmr.msra.gmra.mxu2 %vm161_vm0, %v913_v4  ;;  %v28_v9 = vld [vmem:[%s1249_s0 + $0x18] sm:$0xff]  ;;  %188 = vmatpush.msra.mxu0 %v913_v4  ;;  %v30_v10 = vld [vmem:[%s1249_s0 + $0x28] sm:$0xff]  ;;  %s865_s9 = smov [#allocation2]   ;;  %s725_s13 = sshll.u32 %s1254_s5, 4  ;;  %s726_s13 = int_to_ptr.hbm [resolvable:$true] %s725_s13 }
   0xa   :  { %334 = vmatpush.msra.mxu3 %v907_v2  ;;  %49 = vperm.xlu0 %833, %v26_v8   ;;  %v31_v11 = vld [vmem:[%s1249_s0 + $0x30] sm:$0xff]  ;;  %v32_v12 = vld [vmem:[%s1249_s0 + $0x38] sm:$0xff]  ;;  %v33_v13 = vld [vmem:[%s1249_s0 + $0x40] sm:$0xff]  ;;  %s723_s10 = sshll.u32 %s865_s9, 4  ;;  %s724_s10 = int_to_ptr.vmem [resolvable:$true] %s723_s10 }
   0xb   :  { %189 = vmatpush.msra.mxu0 %v925_v7  ;;  %59 = vperm.xlu1 %834, %v28_v9   ;;  %v34_v14 = vld [vmem:[%s1249_s0 + $0x48] sm:$0xff]  ;;  %v35_v15 = vld [vmem:[%s1249_s0 + $0x50] sm:$0xff]  ;;  %v36_v16 = vld [vmem:[%s1249_s0 + $0x58] sm:$0xff] }
   0xc   :  { %734 = vmatmul.msk.f32.vlgmr.msra.gmra.mxu0 %vm161_vm0, %v925_v7  ;;  %335 = vmatpush.msra.mxu3 %v913_v4  ;;  %v37_v17 = vld [vmem:[%s1249_s0 + $0x60] sm:$0xff]  ;;  %v38_v18 = vld [vmem:[%s1249_s0 + $0x68] sm:$0xff]  ;;  %v39_v19 = vld [vmem:[%s1249_s0 + $0x70] sm:$0xff] }
   0xd   :  { %69 = vperm.xlu2 %835, %v30_v10   ;;  %v984_v20 = vld [vmem:[%s1250_s1] ss:$0 sm:$0xff]  ;;  %v40_v32 = vld [vmem:[%s1249_s0 + $0x78] sm:$0xff] }
   0xe   :  { %336 = vmatpush.msra.mxu3 %v925_v7  ;;  %v989_v21 = vld [vmem:[%s1253_s4] ss:$0 sm:$0xff] }
  0x11   :  { %736 = vmatmul.msk.f32.gmra.mxu2 %vm161_vm0, %v907_v2 }
  0x12   :  { %74 = vperm.xlu0 %833, %v31_v11  }
  0x13   :  { %79 = vperm.xlu1 %834, %v32_v12  }
  0x15   :  { %84 = vperm.xlu2 %835, %v33_v13  }
  0x19   :  { %737 = vmatmul.msk.f32.gmra.mxu2 %vm161_vm0, %v899_v0 }
  0x1a   :  { %89 = vperm.xlu0 %833, %v34_v14  }
  0x1b   :  { %94 = vperm.xlu1 %834, %v35_v15  }
  0x1d   :  { %99 = vperm.xlu2 %835, %v36_v16  }
  0x22   :  { %104 = vperm.xlu0 %833, %v37_v17  }
  0x23   :  { %109 = vperm.xlu1 %834, %v38_v18  }
  0x25   :  { %114 = vperm.xlu2 %835, %v39_v19  }
  0x2a   :  { %119 = vperm.xlu0 %833, %v40_v32  }
  0x5f   :  { %v65_v35 = vpop.permute.xlu2 %64 }
  0x60   :  { %v129_v37 = vmul.f32 %v984_v20, %v65_v35 }
  0x62   :  { %v1020_v39 = vadd.f32 %v989_v21, %v129_v37 }
  0x67   :  { %v70_v40 = vpop.permute.xlu2 %69 }
  0x68   :  { %v130_v41 = vmul.f32 %v984_v20, %v70_v40 }
  0x6a   :  { %v1026_v43 = vadd.f32 %v989_v21, %v130_v41 }
  0x6f   :  { %v85_v51 = vpop.permute.xlu2 %84 }
  0x70   :  { %v133_v52 = vmul.f32 %v984_v20, %v85_v51 }
  0x72   :  { %v1059_v53 = vadd.f32 %v989_v21, %v133_v52 }
  0x74   :  { %v45_v22 = vpop.permute.xlu0 %44 }
  0x75   :  { %v125_v23 = vmul.f32 %v984_v20, %v45_v22  ;;  %v55_v26 = vpop.permute.xlu1 %54 }
  0x76   :  { %v127_v29 = vmul.f32 %v984_v20, %v55_v26 }
  0x77   :  { %v993_v24 = vadd.f32 %v989_v21, %v125_v23  ;;  %v100_v60 = vpop.permute.xlu2 %99 }
  0x78   :  { %v1005_v30 = vadd.f32 %v989_v21, %v127_v29  ;;  %v136_v61 = vmul.f32 %v984_v20, %v100_v60 }
  0x79   :  { %746 = vmatmul.msk.f32.vlgmr.msra.gmra.mxu3 %vm161_vm0, %v993_v24 }
  0x7a   :  { %v1084_v62 = vadd.f32 %v989_v21, %v136_v61 }
  0x7c   :  { %v50_v25 = vpop.permute.xlu0 %49 }
  0x7d   :  { %v126_v27 = vmul.f32 %v984_v20, %v50_v25  ;;  %v60_v31 = vpop.permute.xlu1 %59 }
  0x7e   :  { %v128_v33 = vmul.f32 %v984_v20, %v60_v31 }
  0x7f   :  { %v999_v28 = vadd.f32 %v989_v21, %v126_v27  ;;  %v115_v5 = vpop.permute.xlu2 %114 }
  0x80   :  { %v1014_v36 = vadd.f32 %v989_v21, %v128_v33  ;;  %v139_v6 = vmul.f32 %v984_v20, %v115_v5 }
  0x81   :  { %747 = vmatmul.msk.f32.gmra.mxu3 %vm161_vm0, %v999_v28 }
  0x84   :  { %v75_v44 = vpop.permute.xlu0 %74 }
  0x85   :  { %v131_v46 = vmul.f32 %v984_v20, %v75_v44  ;;  %v80_v48 = vpop.permute.xlu1 %79 }
  0x86   :  { %v132_v49 = vmul.f32 %v984_v20, %v80_v48 }
  0x87   :  { %v1037_v47 = vadd.f32 %v989_v21, %v131_v46 }
  0x88   :  { %v1048_v50 = vadd.f32 %v989_v21, %v132_v49 }
  0x89   :  { %748 = vmatmul.msk.f32.gmra.mxu3 %vm161_vm0, %v1005_v30  ;;  %v191_v45 = vpop.f32.mrf.mxu0 }
  0x8c   :  { %v194_v34 = vpop.f32.mrf.mxu2  ;;  %v90_v54 = vpop.permute.xlu0 %89 }
  0x8d   :  { %v134_v55 = vmul.f32 %v984_v20, %v90_v54  ;;  %v95_v57 = vpop.permute.xlu1 %94 }
  0x8e   :  { %v135_v58 = vmul.f32 %v984_v20, %v95_v57 }
  0x8f   :  { %v1068_v56 = vadd.f32 %v989_v21, %v134_v55 }
  0x90   :  { %v1076_v59 = vadd.f32 %v989_v21, %v135_v58 }
  0x91   :  { %749 = vmatmul.msk.f32.gmra.mxu3 %vm161_vm0, %v1014_v36 }
  0x94   :  { %v197_v38 = vpop.f32.mrf.mxu2  ;;  %v105_v63 = vpop.permute.xlu0 %104 }
  0x99   :  { %750 = vmatmul.msk.f32.gmra.mxu3 %vm161_vm0, %v1020_v39 }
  0x9c   :  { %v200_v42 = vpop.f32.mrf.mxu2  ;;  %v120_v8 = vpop.permute.xlu0 %119 }
  0x9d   :  { %215 = vmatpush.msrb.mxu0 %v200_v42  ;;  %827 = vmatpush.msra.mxu1 %v200_v42  ;;  %v140_v9 = vmul.f32 %v984_v20, %v120_v8 }
  0x9e   :  { %256 = vmatpush.msrb.mxu2 %v200_v42 }
  0x9f   :  { %216 = vmatpush.msrb.mxu0 %v197_v38  ;;  %828 = vmatpush.msra.mxu1 %v197_v38  ;;  %v1120_v11 = vadd.f32 %v989_v21, %v140_v9 }
  0xa0   :  { %257 = vmatpush.msrb.mxu2 %v197_v38 }
  0xa1   :  { %217 = vmatpush.msrb.mxu0 %v194_v34  ;;  %829 = vmatpush.msra.mxu1 %v194_v34 }
  0xa2   :  { %258 = vmatpush.msrb.mxu2 %v194_v34  ;;  %751 = vmatmul.msk.f32.gmra.mxu3 %vm161_vm0, %v1026_v43 }
  0xa3   :  { %218 = vmatpush.msrb.mxu0 %v191_v45  ;;  %830 = vmatpush.msra.mxu1 %v191_v45 }
  0xa4   :  { %259 = vmatpush.msrb.mxu2 %v191_v45  ;;  %738 = vmatmul.msk.f32.vlgmr.msrb.gmra.mxu0 %vm161_vm0, %v925_v7  ;;  %v1108_v7 = vadd.f32 %v989_v21, %v139_v6 }
  0xa5   :  { %739 = vmatmul.msk.f32.vlgmr.msra.gmra.mxu1 %vm161_vm0, %v913_v4  ;;  %742 = vmatmul.msk.f32.vlgmr.msrb.gmra.mxu2 %vm161_vm0, %v191_v45 }
  0xa6   :  { %413 = vmatpush.msra.mxu0 %v200_v42 }
  0xa8   :  { %414 = vmatpush.msra.mxu0 %v197_v38 }
  0xaa   :  { %415 = vmatpush.msra.mxu0 %v194_v34  ;;  %752 = vmatmul.msk.f32.gmra.mxu3 %vm161_vm0, %v1037_v47 }
  0xac   :  { %416 = vmatpush.msra.mxu0 %v191_v45 }
  0xad   :  { %740 = vmatmul.msk.f32.gmra.mxu1 %vm161_vm0, %v907_v2  ;;  %743 = vmatmul.msk.f32.gmra.mxu2 %vm161_vm0, %v194_v34  ;;  %v110_v2 = vpop.permute.xlu1 %109 }
  0xae   :  { %762 = vmatmul.msk.f32.vlgmr.msra.gmra.mxu0 %vm161_vm0, %v993_v24  ;;  %v138_v3 = vmul.f32 %v984_v20, %v110_v2 }
  0xb0   :  { %v1100_v4 = vadd.f32 %v989_v21, %v138_v3 }
  0xb2   :  { %753 = vmatmul.msk.f32.gmra.mxu3 %vm161_vm0, %v1048_v50 }
  0xb5   :  { %741 = vmatmul.msk.f32.gmra.mxu1 %vm161_vm0, %v899_v0  ;;  %744 = vmatmul.msk.f32.gmra.mxu2 %vm161_vm0, %v197_v38  ;;  %v137_v0 = vmul.f32 %v984_v20, %v105_v63 }
  0xb6   :  { %763 = vmatmul.msk.f32.gmra.mxu0 %vm161_vm0, %v999_v28 }
  0xb7   :  { %v1092_v1 = vadd.f32 %v989_v21, %v137_v0 }
  0xba   :  { %754 = vmatmul.msk.f32.gmra.mxu3 %vm161_vm0, %v1059_v53 }
  0xbd   :  { %745 = vmatmul.msk.f32.gmra.mxu2 %vm161_vm0, %v200_v42 }
  0xbe   :  { %764 = vmatmul.msk.f32.gmra.mxu0 %vm161_vm0, %v1005_v30 }
  0xc2   :  { %755 = vmatmul.msk.f32.gmra.mxu3 %vm161_vm0, %v1068_v56 }
  0xc6   :  { %765 = vmatmul.msk.f32.gmra.mxu0 %vm161_vm0, %v1014_v36 }
  0xca   :  { %756 = vmatmul.msk.f32.gmra.mxu3 %vm161_vm0, %v1076_v59 }
  0xce   :  { %766 = vmatmul.msk.f32.gmra.mxu0 %vm161_vm0, %v1020_v39 }
  0xd2   :  { %757 = vmatmul.msk.f32.gmra.mxu3 %vm161_vm0, %v1084_v62 }
  0xd6   :  { %767 = vmatmul.msk.f32.gmra.mxu0 %vm161_vm0, %v1026_v43 }
  0xda   :  { %758 = vmatmul.msk.f32.gmra.mxu3 %vm161_vm0, %v1092_v1 }
  0xde   :  { %768 = vmatmul.msk.f32.gmra.mxu0 %vm161_vm0, %v1037_v47 }
  0xe2   :  { %759 = vmatmul.msk.f32.gmra.mxu3 %vm161_vm0, %v1100_v4 }
  0xe6   :  { %769 = vmatmul.msk.f32.gmra.mxu0 %vm161_vm0, %v1048_v50 }
  0xea   :  { %760 = vmatmul.msk.f32.gmra.mxu3 %vm161_vm0, %v1108_v7 }
  0xee   :  { %770 = vmatmul.msk.f32.gmra.mxu0 %vm161_vm0, %v1059_v53 }
  0xf2   :  { %761 = vmatmul.msk.f32.gmra.mxu3 %vm161_vm0, %v1120_v11 }
  0xf6   :  { %771 = vmatmul.msk.f32.gmra.mxu0 %vm161_vm0, %v1068_v56 }
  0xfc   :  { %v338_v10 = vpop.f32.mrf.mxu3 }
  0xfd   :  { %v1155_v49 = vadd.f32 %v338_v10, %v999_v28 }
  0xfe   :  { %772 = vmatmul.msk.f32.gmra.mxu0 %vm161_vm0, %v1076_v59 }
 0x104   :  { %v341_v12 = vpop.f32.mrf.mxu3 }
 0x105   :  { %v387_v52 = vadd.f32 %v341_v12, %v1005_v30 }
 0x106   :  { %773 = vmatmul.msk.f32.gmra.mxu0 %vm161_vm0, %v1084_v62 }
 0x10c   :  { %v344_v13 = vpop.f32.mrf.mxu3 }
 0x10d   :  { %v388_v23 = vadd.f32 %v344_v13, %v1014_v36 }
 0x10e   :  { %774 = vmatmul.msk.f32.gmra.mxu0 %vm161_vm0, %v1092_v1 }
 0x114   :  { %v347_v14 = vpop.f32.mrf.mxu3 }
 0x115   :  { %v389_v32 = vadd.f32 %v347_v14, %v1020_v39 }
 0x116   :  { %775 = vmatmul.msk.f32.gmra.mxu0 %vm161_vm0, %v1100_v4 }
 0x11c   :  { %v350_v15 = vpop.f32.mrf.mxu3 }
 0x11d   :  { %v390_v38 = vadd.f32 %v350_v15, %v1026_v43 }
 0x11e   :  { %776 = vmatmul.msk.f32.gmra.mxu0 %vm161_vm0, %v1108_v7 }
 0x121   :  { %v220_v16 = vpop.f32.mrf.mxu0 }
 0x122   :  { %v223_v17 = vpop.f32.mrf.mxu1 }
 0x125   :  { %v353_v18 = vpop.f32.mrf.mxu3 }
 0x126   :  { %777 = vmatmul.msk.f32.gmra.mxu0 %vm161_vm0, %v1120_v11  ;;  %v391_v45 = vadd.f32 %v353_v18, %v1037_v47 }
 0x128   :  { %v261_v19 = vpop.f32.mrf.mxu2 }
 0x12a   :  { %v226_v20 = vpop.f32.mrf.mxu1 }
 0x12b   :  { %v418_v21 = vpop.f32.mrf.mxu0 }
 0x12d   :  { %v356_v22 = vpop.f32.mrf.mxu3 }
 0x12e   :  { %v392_v51 = vadd.f32 %v356_v22, %v1048_v50 }
 0x130   :  { %v264_v25 = vpop.f32.mrf.mxu2 }
 0x132   :  { %v229_v26 = vpop.f32.mrf.mxu1 }
 0x133   :  { %v421_v27 = vpop.f32.mrf.mxu0  ;;  %492 = vmatpush.msrb.mxu1 %v229_v26 }
 0x134   :  { %v1135_v29 = vadd.f32 %v421_v27, %v388_v23 }
 0x135   :  { %493 = vmatpush.msrb.mxu1 %v226_v20  ;;  %v359_v31 = vpop.f32.mrf.mxu3 }
 0x136   :  { %v393_v58 = vadd.f32 %v359_v31, %v1059_v53 }
 0x137   :  { %494 = vmatpush.msrb.mxu1 %v223_v17 }
 0x138   :  { %v267_v33 = vpop.f32.mrf.mxu2 }
 0x139   :  { %495 = vmatpush.msrb.mxu1 %v220_v16 }
 0x13a   :  { %778 = vmatmul.msk.f32.vlgmr.msrb.gmra.mxu1 %vm161_vm0, %v993_v24 }
 0x13b   :  { %v424_v34 = vpop.f32.mrf.mxu0 }
 0x13c   :  { %v1140_v35 = vadd.f32 %v424_v34, %v389_v32 }
 0x13d   :  { %v362_v37 = vpop.f32.mrf.mxu3 }
 0x140   :  { %v270_v40 = vpop.f32.mrf.mxu2 }
 0x141   :  { %582 = vmatpush.msra.mxu2 %v270_v40 }
 0x142   :  { %779 = vmatmul.msk.f32.gmra.mxu1 %vm161_vm0, %v999_v28  ;;  %v1165_v28 = vadd.f32 %v418_v21, %v387_v52 }
 0x143   :  { %v427_v41 = vpop.f32.mrf.mxu0  ;;  %583 = vmatpush.msra.mxu2 %v267_v33 }
 0x144   :  { %v1145_v42 = vadd.f32 %v427_v41, %v390_v38 }
 0x145   :  { %584 = vmatpush.msra.mxu2 %v264_v25  ;;  %v365_v44 = vpop.f32.mrf.mxu3 }
 0x146   :  { %v395_v3 = vadd.f32 %v365_v44, %v1076_v59 }
 0x147   :  { %585 = vmatpush.msra.mxu2 %v261_v19 }
 0x148   :  { %794 = vmatmul.msk.f32.vlgmr.msra.gmra.mxu2 %vm161_vm0, %v993_v24 }
 0x149   :  { %623 = vmatpush.msrb.mxu2 %v270_v40 }
 0x14a   :  { %780 = vmatmul.msk.f32.gmra.mxu1 %vm161_vm0, %v1005_v30  ;;  %v394_v30 = vadd.f32 %v362_v37, %v1068_v56 }
 0x14b   :  { %v430_v46 = vpop.f32.mrf.mxu0  ;;  %624 = vmatpush.msrb.mxu2 %v267_v33 }
 0x14c   :  { %v1152_v48 = vadd.f32 %v430_v46, %v391_v45 }
 0x14d   :  { %625 = vmatpush.msrb.mxu2 %v264_v25  ;;  %v368_v54 = vpop.f32.mrf.mxu3 }
 0x14f   :  { %626 = vmatpush.msrb.mxu2 %v261_v19 }
 0x150   :  { %795 = vmatmul.msk.f32.gmra.mxu2 %vm161_vm0, %v1155_v49 }
 0x151   :  { %664 = vmatpush.msra.mxu2 %v270_v40 }
 0x152   :  { %781 = vmatmul.msk.f32.gmra.mxu1 %vm161_vm0, %v1014_v36 }
 0x153   :  { %665 = vmatpush.msra.mxu2 %v267_v33  ;;  %v433_v55 = vpop.f32.mrf.mxu0 }
 0x154   :  { %v1163_v57 = vadd.f32 %v433_v55, %v392_v51 }
 0x155   :  { %666 = vmatpush.msra.mxu2 %v264_v25  ;;  %v371_v61 = vpop.f32.mrf.mxu3 }
 0x157   :  { %667 = vmatpush.msra.mxu2 %v261_v19 }
 0x158   :  { %796 = vmatmul.msk.f32.gmra.mxu2 %vm161_vm0, %v1165_v28 }
 0x15a   :  { %782 = vmatmul.msk.f32.gmra.mxu1 %vm161_vm0, %v1020_v39  ;;  %v396_v39 = vadd.f32 %v368_v54, %v1084_v62 }
 0x15b   :  { %v436_v60 = vpop.f32.mrf.mxu0 }
 0x15c   :  { %v472_v36 = vadd.f32 %v436_v60, %v393_v58 }
 0x15d   :  { %v374_v2 = vpop.f32.mrf.mxu3 }
 0x162   :  { %783 = vmatmul.msk.f32.gmra.mxu1 %vm161_vm0, %v1026_v43  ;;  %v397_v43 = vadd.f32 %v371_v61, %v1092_v1 }
 0x163   :  { %v439_v63 = vpop.f32.mrf.mxu0 }
 0x164   :  { %v473_v0 = vadd.f32 %v439_v63, %v394_v30 }
 0x165   :  { %v377_v8 = vpop.f32.mrf.mxu3 }
 0x16a   :  { %784 = vmatmul.msk.f32.gmra.mxu1 %vm161_vm0, %v1037_v47  ;;  %v398_v47 = vadd.f32 %v374_v2, %v1100_v4 }
 0x16b   :  { %v442_v5 = vpop.f32.mrf.mxu0 }
 0x16c   :  { %v474_v6 = vadd.f32 %v442_v5, %v395_v3 }
 0x16d   :  { %v380_v12 = vpop.f32.mrf.mxu3 }
 0x172   :  { %785 = vmatmul.msk.f32.gmra.mxu1 %vm161_vm0, %v1048_v50  ;;  %v399_v50 = vadd.f32 %v377_v8, %v1108_v7 }
 0x173   :  { %v445_v9 = vpop.f32.mrf.mxu0 }
 0x174   :  { %v475_v10 = vadd.f32 %v445_v9, %v396_v39 }
 0x175   :  { %v383_v16 = vpop.f32.mrf.mxu3 }
 0x17a   :  { %786 = vmatmul.msk.f32.gmra.mxu1 %vm161_vm0, %v1059_v53  ;;  %v400_v53 = vadd.f32 %v380_v12, %v1120_v11 }
 0x17b   :  { %v448_v13 = vpop.f32.mrf.mxu0 }
 0x17c   :  { %v476_v14 = vadd.f32 %v448_v13, %v397_v43 }
 0x182   :  { %787 = vmatmul.msk.f32.gmra.mxu1 %vm161_vm0, %v1068_v56 }
 0x183   :  { %v451_v15 = vpop.f32.mrf.mxu0 }
 0x184   :  { %v477_v17 = vadd.f32 %v451_v15, %v398_v47 }
 0x18a   :  { %788 = vmatmul.msk.f32.gmra.mxu1 %vm161_vm0, %v1076_v59 }
 0x18b   :  { %v454_v18 = vpop.f32.mrf.mxu0 }
 0x18c   :  { %v478_v19 = vadd.f32 %v454_v18, %v399_v50  ;;  %v681_v50 = vld [vmem:[%s1252_s3] sm:$0xff] }
 0x192   :  { %789 = vmatmul.msk.f32.gmra.mxu1 %vm161_vm0, %v1084_v62 }
 0x193   :  { %v457_v20 = vpop.f32.mrf.mxu0 }
 0x194   :  { %v479_v21 = vadd.f32 %v457_v20, %v400_v53 }
 0x19a   :  { %790 = vmatmul.msk.f32.gmra.mxu1 %vm161_vm0, %v1092_v1 }
 0x19b   :  { %v460_v56 = vpop.f32.mrf.mxu0 }
 0x1a2   :  { %791 = vmatmul.msk.f32.gmra.mxu1 %vm161_vm0, %v1100_v4 }
 0x1a3   :  { %v462_v22 = vpop.f32.mrf.mxu0 }
 0x1aa   :  { %792 = vmatmul.msk.f32.gmra.mxu1 %vm161_vm0, %v1108_v7 }
 0x1b2   :  { %793 = vmatmul.msk.f32.gmra.mxu1 %vm161_vm0, %v1120_v11 }
 0x1b7   :  { %v497_v59 = vpop.f32.mrf.mxu1 }
 0x1b8   :  { %v1202_v23 = vadd.f32 %v497_v59, %v1135_v29 }
 0x1ba   :  { %797 = vmatmul.msk.f32.gmra.mxu2 %vm161_vm0, %v1202_v23 }
 0x1bf   :  { %v500_v62 = vpop.f32.mrf.mxu1 }
 0x1c0   :  { %v546_v25 = vadd.f32 %v500_v62, %v1140_v35 }
 0x1c7   :  { %v503_v1 = vpop.f32.mrf.mxu1 }
 0x1c8   :  { %v547_v11 = vadd.f32 %v503_v1, %v1145_v42 }
 0x1cb   :  { %v587_v26 = vpop.f32.mrf.mxu2 }
 0x1cc   :  { %v1207_v4 = vadd.f32 %v587_v26, %v546_v25 }
 0x1ce   :  { %798 = vmatmul.msk.f32.vlgmr.msrb.gmra.mxu2 %vm161_vm0, %v1207_v4 }
 0x1cf   :  { %v506_v7 = vpop.f32.mrf.mxu1 }
 0x1d0   :  { %v548_v33 = vadd.f32 %v506_v7, %v1152_v48 }
 0x1d3   :  { %v590_v27 = vpop.f32.mrf.mxu2 }
 0x1d4   :  { %v591_v31 = vadd.f32 %v590_v27, %v547_v11 }
 0x1d6   :  { %799 = vmatmul.msk.f32.gmra.mxu2 %vm161_vm0, %v591_v31 }
 0x1d7   :  { %v509_v29 = vpop.f32.mrf.mxu1 }
 0x1d8   :  { %v549_v32 = vadd.f32 %v509_v29, %v1163_v57 }
 0x1db   :  { %v593_v34 = vpop.f32.mrf.mxu2 }
 0x1dc   :  { %v594_v35 = vadd.f32 %v593_v34, %v548_v33 }
 0x1de   :  { %800 = vmatmul.msk.f32.gmra.mxu2 %vm161_vm0, %v594_v35 }
 0x1df   :  { %v512_v37 = vpop.f32.mrf.mxu1 }
 0x1e0   :  { %v550_v38 = vadd.f32 %v512_v37, %v472_v36 }
 0x1e7   :  { %v515_v40 = vpop.f32.mrf.mxu1 }
 0x1e8   :  { %v551_v41 = vadd.f32 %v515_v40, %v473_v0 }
 0x1ef   :  { %v518_v44 = vpop.f32.mrf.mxu1 }
 0x1f0   :  { %v552_v45 = vadd.f32 %v518_v44, %v474_v6 }
 0x1f7   :  { %v521_v42 = vpop.f32.mrf.mxu1 }
 0x1f8   :  { %v553_v46 = vadd.f32 %v521_v42, %v475_v10 }
 0x1ff   :  { %v524_v51 = vpop.f32.mrf.mxu1 }
 0x200   :  { %v554_v52 = vadd.f32 %v524_v51, %v476_v14 }
 0x207   :  { %v527_v54 = vpop.f32.mrf.mxu1 }
 0x208   :  { %v555_v55 = vadd.f32 %v527_v54, %v477_v17 }
 0x20f   :  { %v530_v58 = vpop.f32.mrf.mxu1 }
 0x210   :  { %v556_v57 = vadd.f32 %v530_v58, %v478_v19 }
 0x217   :  { %v533_v60 = vpop.f32.mrf.mxu1 }
 0x218   :  { %v557_v48 = vadd.f32 %v533_v60, %v479_v21 }
 0x21f   :  { %v536_v61 = vpop.f32.mrf.mxu1 }
 0x227   :  { %v538_v30 = vpop.f32.mrf.mxu1 }
 0x22f   :  { %v540_v63 = vpop.f32.mrf.mxu1 }
 0x23d   :  { %v596_v2 = vpop.f32.mrf.mxu2 }
 0x23e   :  { %v597_v3 = vadd.f32 %v596_v2, %v549_v32 }
 0x240   :  { %801 = vmatmul.msk.f32.gmra.mxu2 %vm161_vm0, %v597_v3 }
 0x251   :  { %v628_v36 = vpop.f32.mrf.mxu2 }
 0x252   :  { %v629_v0 = vadd.f32 %v628_v36, %v550_v38 }
 0x254   :  { %802 = vmatmul.msk.f32.vlgmr.msra.gmra.mxu2 %vm161_vm0, %v629_v0 }
 0x259   :  { %v631_v5 = vpop.f32.mrf.mxu2 }
 0x25a   :  { %v632_v6 = vadd.f32 %v631_v5, %v551_v41 }
 0x25c   :  { %803 = vmatmul.msk.f32.gmra.mxu2 %vm161_vm0, %v632_v6 }
 0x261   :  { %v634_v39 = vpop.f32.mrf.mxu2 }
 0x262   :  { %v635_v8 = vadd.f32 %v634_v39, %v552_v45 }
 0x264   :  { %804 = vmatmul.msk.f32.gmra.mxu2 %vm161_vm0, %v635_v8 }
 0x2c3   :  { %v637_v9 = vpop.f32.mrf.mxu2 }
 0x2c4   :  { %v638_v10 = vadd.f32 %v637_v9, %v553_v46 }
 0x2c6   :  { %805 = vmatmul.msk.f32.gmra.mxu2 %vm161_vm0, %v638_v10 }
 0x2d7   :  { %v669_v43 = vpop.f32.mrf.mxu2 }
 0x2d8   :  { %v670_v17 = vadd.f32 %v669_v43, %v554_v52 }
 0x2df   :  { %v672_v12 = vpop.f32.mrf.mxu2 }
 0x2e0   :  { %v673_v16 = vadd.f32 %v672_v12, %v555_v55 }
 0x2e7   :  { %v675_v13 = vpop.f32.mrf.mxu2 }
 0x2e8   :  { %v676_v15 = vadd.f32 %v675_v13, %v556_v57 }
 0x349   :  { %v678_v14 = vpop.f32.mrf.mxu2 }
 0x34a   :  { %v679_v47 = vadd.f32 %v678_v14, %v557_v48 }
 0x34c   :  { %806 = vmatpush.xpose.msk.msrb.mxu3 %vm161_vm0, %v679_v47 }
 0x350   :  { %807 = vmatpush.xpose.msk.msrb.mxu3 %vm161_vm0, %v676_v15 }
 0x354   :  { %808 = vmatpush.xpose.msk.msrb.mxu3 %vm161_vm0, %v673_v16 }
 0x358   :  { %809 = vmatpush.xpose.msk.msrb.mxu3 %vm161_vm0, %v670_v17 }
 0x35c   :  { %810 = vmatpush.xpose.msk.msrb.mxu3 %vm161_vm0, %v638_v10 }
 0x360   :  { %811 = vmatpush.xpose.msk.msrb.mxu3 %vm161_vm0, %v635_v8 }
 0x364   :  { %812 = vmatpush.xpose.msk.msrb.mxu3 %vm161_vm0, %v632_v6 }
 0x368   :  { %813 = vmatpush.xpose.msk.msrb.mxu3 %vm161_vm0, %v629_v0 }
 0x36c   :  { %814 = vmatpush.xpose.msk.msrb.mxu3 %vm161_vm0, %v597_v3 }
 0x370   :  { %815 = vmatpush.xpose.msk.msrb.mxu3 %vm161_vm0, %v594_v35 }
 0x374   :  { %816 = vmatpush.xpose.msk.msrb.mxu3 %vm161_vm0, %v591_v31 }
 0x378   :  { %817 = vmatpush.xpose.msk.msrb.mxu3 %vm161_vm0, %v1207_v4 }
 0x37c   :  { %818 = vmatpush.xpose.msk.msrb.mxu3 %vm161_vm0, %v1202_v23 }
 0x380   :  { %819 = vmatpush.xpose.msk.msrb.mxu3 %vm161_vm0, %v1165_v28 }
 0x384   :  { %820 = vmatpush.xpose.msk.msrb.mxu3 %vm161_vm0, %v1155_v49 }
 0x388   :  { %821 = vmatpush.xpose.msk.msrb.mxu3 %vm161_vm0, %v993_v24 }
 0x38b   :  { %822 = vmatmul.msk.f32.vlgmr.msrb.gmra.mxu3 %vm161_vm0, %v681_v50 }
 0x40e   :  { %v714_v28 = vpop.f32.mrf.mxu3 }
 0x40f   :  { %717 = vst [vmem:[#allocation2] sm:$0xff] %v714_v28 }
 0x410   :  { %728 = dma.vmem_to_hbm [thread:$0]  %s724_s10, 128, %s726_s13, [#allocation3]  }
 0x411   :  { %862 = dma.done.wait [#allocation3], 128  }
 0x412   :  { %863 = vsyncadd [#allocation3], 4294967168 }
 0x413   :  { %733 = vsyncpa [#allocation3], 1 }

</bundles_post_ra>
